<compile_context>
chip_gen: v7x
topology: tpu7x:2x2x1
jax: 0.10.0
libtpu: 0.0.40
codegen_flags: <defaults>
</compile_context>

<pallas_src>
import functools

import jax
import jax.numpy as jnp
from jax import lax
from jax.experimental import pallas as pl
from jax.experimental.pallas import tpu as pltpu


# Batched contraction of activations against PyTorch-layout weights:
#   act[b, n, f] . w[b, o, f] -> [b, n, o]      (== per-task  act @ w.T)
_DN_ACT_W = (((2,), (2,)), ((0,), (0,)))

_LANE = 128


def _cdiv(a, b):
    return -(-a // b)


def _round_up(x, m):
    return _cdiv(x, m) * m


def _sublane(dtype):
    return {4: 8, 2: 16, 1: 32}.get(jnp.dtype(dtype).itemsize, 8)


def _padded_2d_bytes(rows, cols, dtype):
    """VMEM bytes of a [rows, cols] tile after (sublane, lane) padding."""
    it = jnp.dtype(dtype).itemsize
    return _round_up(int(rows), _sublane(dtype)) * _round_up(int(cols), _LANE) * it


def _tpu_generation_info():
    """Returns (tensorcores_per_chip, scoped-VMEM budget in bytes).

    v5e/v6e: 1 TC, 128 MiB VMEM -> generous 96 MiB budget.
    v7x:     2 TCs, only 64 MiB VMEM -> 48 MiB budget.
    Unknown: conservative (1 TC, 48 MiB)."""
    try:
        kind = jax.devices()[0].device_kind.lower()
    except Exception:  # pragma: no cover - defensive
        return 1, 48 * 1024 * 1024
    if ("v7" in kind) or ("7x" in kind):
        return 2, 48 * 1024 * 1024
    if ("v5" in kind) or ("v6" in kind) or ("v4" in kind):
        return 1, 96 * 1024 * 1024
    return 1, 48 * 1024 * 1024


def _meta_loss_kernel(n_weights, no_sp, no_mean, inv_count, *refs):
    """refs = (y_ref, w0_ref, ..., w{n-1}_ref, out_ref); one block = TB tasks."""
    y_ref = refs[0]
    w_refs = refs[1:1 + n_weights]
    out_ref = refs[1 + n_weights]

    h = y_ref[...]                                               # [TB, N, in]
    for i in range(n_weights - 1):
        w = w_refs[i][...]                                       # [TB, out_i, in_i]
        # astype is elided when dtypes already match (f32 path -> no extra VPU ops).
        h = lax.dot_general(h.astype(w.dtype), w, _DN_ACT_W,
                            preferred_element_type=jnp.float32)  # [TB, N, out_i] f32
        h = jnp.maximum(h, 0.0)                                  # F.relu

    w_last = w_refs[n_weights - 1][...]
    h = h.astype(w_last.dtype)

    if no_mean:
        # Operand order swapped so the result is [TB, out, N]: the store's lane
        # axis is N (dense-ish) instead of a width-out_last masked store.
        z = lax.dot_general(w_last, h, _DN_ACT_W,
                            preferred_element_type=jnp.float32)  # [TB, out, N]
        if not no_sp:
            z = jnp.logaddexp(z, 0.0)                            # stable softplus
        out_ref[...] = z.astype(out_ref.dtype)
    else:
        z = lax.dot_general(h, w_last, _DN_ACT_W,
                            preferred_element_type=jnp.float32)  # [TB, N, out]
        if not no_sp:
            z = jnp.logaddexp(z, 0.0)
        out_last = z.shape[2]
        if out_last == 1:
            z_rows = z[..., 0]                                   # [TB, N] (no lane reduce)
        else:
            z_rows = jnp.sum(z, axis=2)                          # [TB, N]
        # Per-task mean packed lane-dense as a [1, TB] row: the reducing row
        # already carries the 1/(N*out) scale, so no separate broadcast multiply.
        scale_row = jnp.full((1, z_rows.shape[1]), inv_count, jnp.float32)
        means = lax.dot_general(scale_row, z_rows, (((1,), (1,)), ((), ())),
                                preferred_element_type=jnp.float32)  # [1, TB]
        out_ref[...] = means[None].astype(out_ref.dtype)         # [1, 1, TB]


def _choose_blocking(batch, per_task_bytes, num_tc, vmem_budget):
    """Pick (tasks_per_block, n_blocks, use_buffered3) for the task grid."""
    tb_cap = max(1, vmem_budget // (2 * per_task_bytes))          # double-buffered
    n_blocks = max(1, _cdiv(batch, tb_cap))
    if num_tc > 1 and batch > 1:
        # At least one block per TensorCore and a core-shardable multiple.
        n_blocks = _round_up(max(n_blocks, num_tc), num_tc)
    tb = _cdiv(batch, n_blocks)
    use_buffered3 = (n_blocks >= 4) and (3 * tb * per_task_bytes <= vmem_budget)
    return tb, n_blocks, use_buffered3


def meta_loss_forward_batched(ys, weights, *, no_sp=False, no_mean=False):
    """Batched MetaLossNetwork.forward over B independent tasks in ONE pallas_call.

    ys:      [B, N, in_dim]
    weights: list of [B, out_i, in_i]   (per-task PyTorch nn.Linear layout)
    returns: [B] per-task means, or [B, N, out_last] if no_mean.
    """
    batch, n_rows, in_dim = ys.shape
    n_w = len(weights)
    out_last = weights[-1].shape[1]

    num_tc, vmem_budget = _tpu_generation_info()

    # Padded per-task VMEM footprint of one pipeline buffer.
    per_task_bytes = _padded_2d_bytes(n_rows, in_dim, ys.dtype)
    for w in weights:
        per_task_bytes += _padded_2d_bytes(w.shape[1], w.shape[2], w.dtype)
    if no_mean:
        per_task_bytes += _padded_2d_bytes(out_last, n_rows, jnp.float32)

    tb, n_blocks, use_buffered3 = _choose_blocking(
        batch, per_task_bytes, num_tc, vmem_budget)
    batch_pad = tb * n_blocks

    # Pad with zero dummy tasks (relu/softplus/mean of zeros is finite) instead
    # of degrading to a serial single-task grid; padded results are sliced off.
    if batch_pad > batch:
        pad = batch_pad - batch
        ys = jnp.concatenate(
            [ys, jnp.zeros((pad,) + ys.shape[1:], ys.dtype)], axis=0)
        weights = [
            jnp.concatenate([w, jnp.zeros((pad,) + w.shape[1:], w.dtype)], axis=0)
            for w in weights]

    buffers = 3 if use_buffered3 else 2
    needed_vmem = buffers * tb * per_task_bytes + (4 << 20)
    vmem_limit = int(min(vmem_budget, max(32 * 1024 * 1024, needed_vmem)))

    inv_count = 1.0 / float(n_rows * out_last)
    kernel = functools.partial(_meta_loss_kernel, n_w, bool(no_sp),
                               bool(no_mean), inv_count)

    # Blocks tile only the task axis; trailing dims are always full-extent.
    spec_kwargs = {"pipeline_mode": pl.Buffered(3)} if use_buffered3 else {}
    in_specs = [pl.BlockSpec((tb,) + tuple(ys.shape[1:]),
                             lambda b: (b, 0, 0), **spec_kwargs)]
    for w in weights:
        in_specs.append(pl.BlockSpec((tb,) + tuple(w.shape[1:]),
                                     lambda b: (b, 0, 0), **spec_kwargs))

    if no_mean:
        out_shape = jax.ShapeDtypeStruct((batch_pad, out_last, n_rows), jnp.float32)
        out_specs = pl.BlockSpec((tb, out_last, n_rows), lambda b: (b, 0, 0))
    else:
        out_shape = jax.ShapeDtypeStruct((n_blocks, 1, tb), jnp.float32)
        out_specs = pl.BlockSpec((1, 1, tb), lambda b: (b, 0, 0))

    result = pl.pallas_call(
        kernel,
        out_shape=out_shape,
        grid=(n_blocks,),
        in_specs=in_specs,
        out_specs=out_specs,
        compiler_params=pltpu.CompilerParams(
            # TODO(synk): verify in xprof that "parallel" core-shards the task
            # grid on v7x; if not, switch this axis to pltpu.CORE_PARALLEL.
            dimension_semantics=("parallel",),
            vmem_limit_bytes=vmem_limit),
    )(ys, *weights)

    if no_mean:
        # [B_pad, out, N] -> [B, N, out]; for out_last == 1 (always true for
        # this module's final layer) the swap is metadata-only, no HBM pass.
        return jnp.swapaxes(result, 1, 2)[:batch]
    # Blocks are in order and tasks within a block are contiguous, so the flat
    # reshape recovers the original task order; slice off dummy-task padding.
    return result.reshape(batch_pad)[:batch]


def meta_loss_forward(y, weights, *, no_sp=False, no_mean=False):
    """Exact equivalent of MetaLossNetwork.forward(y, weights) for one task.

    y: [N, in_dim]; weights: list of [out_i, in_i].
    Returns a scalar (mean) or [N, out_last] if no_mean.
    """
    res = meta_loss_forward_batched(
        y[None], [w[None] for w in weights], no_sp=no_sp, no_mean=no_mean)
    return res[0]


def _reference_forward(y, weights, *, no_sp=False, no_mean=False):
    """Pure-JAX reference of the PyTorch forward, for correctness checking."""
    for i, w in enumerate(weights):
        y = y @ w.T
        if i != len(weights) - 1:
            y = jax.nn.relu(y)
    if not no_sp:
        y = jax.nn.softplus(y)
    return y if no_mean else jnp.mean(y)


if __name__ == "__main__":
    # Module config: in_dim=8, hidden_dim=(32, 32) => weights: [32,8],[32,32],[1,32]
    in_dim = 8
    hidden_dim = (32, 32)
    N = 16        # examples per task
    B = 8         # tasks batched into a single pallas_call

    key = jax.random.PRNGKey(0)
    k_y, k0, k1, k2 = jax.random.split(key, 4)

    ys = jax.random.normal(k_y, (B, N, in_dim), dtype=jnp.float32)

    def _init(k, out_d, in_d):
        bound = 1.0 / jnp.sqrt(jnp.float32(in_d))
        return jax.random.uniform(k, (B, out_d, in_d), jnp.float32, -bound, bound)

    weights = [
        _init(k0, hidden_dim[0], in_dim),
        _init(k1, hidden_dim[1], hidden_dim[0]),
        _init(k2, 1, hidden_dim[1]),
    ]

    # Batched default path (softplus + per-task mean), one kernel call for all B.
    out = meta_loss_forward_batched(ys, weights)                       # [B]
    out = jax.block_until_ready(out)
    ref = jax.vmap(lambda y, w0, w1, w2: _reference_forward(y, [w0, w1, w2]))(
        ys, *weights)
    assert jnp.allclose(out, ref, atol=1e-4, rtol=1e-4), (out, ref)

    # Batched no_mean path ([B, N, 1] per-example losses).
    out_nm = meta_loss_forward_batched(ys, weights, no_mean=True)
    out_nm = jax.block_until_ready(out_nm)
    ref_nm = jax.vmap(lambda y, w0, w1, w2: _reference_forward(
        y, [w0, w1, w2], no_mean=True))(ys, *weights)
    assert jnp.allclose(out_nm, ref_nm, atol=1e-4, rtol=1e-4)

    # Awkward (prime) batch size exercises the zero-task padding path.
    B_odd = 5
    out_odd = meta_loss_forward_batched(ys[:B_odd], [w[:B_odd] for w in weights])
    out_odd = jax.block_until_ready(out_odd)
    assert out_odd.shape == (B_odd,)
    assert jnp.allclose(out_odd, ref[:B_odd], atol=1e-4, rtol=1e-4)

    # Single-task API, mirrors MetaLossNetwork.forward(y, weights) exactly.
    out_1 = meta_loss_forward(ys[0], [w[0] for w in weights])
    out_1 = jax.block_until_ready(out_1)
    ref_1 = _reference_forward(ys[0], [w[0] for w in weights])
    assert jnp.allclose(out_1, ref_1, atol=1e-4, rtol=1e-4), (out_1, ref_1)

    print("KERNEL_OK")
</pallas_src>

<mosaic_0001>
module attributes {stable_mosaic.version = 11 : i64} {
  func.func @_meta_loss_kernel(%arg0: i32, %arg1: memref<8x16x8xf32, #tpu.memory_space<vmem>>, %arg2: memref<8x32x8xf32, #tpu.memory_space<vmem>>, %arg3: memref<8x32x32xf32, #tpu.memory_space<vmem>>, %arg4: memref<8x1x32xf32, #tpu.memory_space<vmem>>, %arg5: memref<1x1x8xf32, #tpu.memory_space<vmem>>) attributes {dimension_semantics = [#tpu.dimension_semantics<parallel>], iteration_bounds = array<i64: 1>, scalar_prefetch = 0 : i64, scratch_operands = 0 : i64, tpu.core_type = #tpu.core_type<tc>, window_params = [{transform_indices = @transform_0, window_bounds = array<i64: 8, 16, 8>}, {transform_indices = @transform_1, window_bounds = array<i64: 8, 32, 8>}, {transform_indices = @transform_2, window_bounds = array<i64: 8, 32, 32>}, {transform_indices = @transform_3, window_bounds = array<i64: 8, 1, 32>}, {transform_indices = @transform_4, window_bounds = array<i64: 1, 1, 8>}]} {
    %c0 = arith.constant 0 : index
    %c0_0 = arith.constant 0 : index
    %c0_1 = arith.constant 0 : index
    %0 = vector.load %arg1[%c0, %c0_0, %c0_1] : memref<8x16x8xf32, #tpu.memory_space<vmem>>, vector<8x16x8xf32>
    %c0_2 = arith.constant 0 : index
    %c0_3 = arith.constant 0 : index
    %c0_4 = arith.constant 0 : index
    %1 = vector.load %arg2[%c0_2, %c0_3, %c0_4] : memref<8x32x8xf32, #tpu.memory_space<vmem>>, vector<8x32x8xf32>
    %cst = arith.constant dense<0.000000e+00> : vector<8x16x32xf32>
    %2 = tpu.matmul %0, %1, %cst {dimension_numbers = #tpu.dot_dimension_numbers<[2], [2], [1], [1], [0, 0, 0, 1, 1, 1], [0], [0]>} : vector<8x16x8xf32>, vector<8x32x8xf32>, vector<8x16x32xf32> -> vector<8x16x32xf32>
    %cst_5 = arith.constant 0.000000e+00 : f32
    %3 = vector.broadcast %cst_5 : f32 to vector<8x16x32xf32>
    %4 = arith.maximumf %2, %3 : vector<8x16x32xf32>
    %c0_6 = arith.constant 0 : index
    %c0_7 = arith.constant 0 : index
    %c0_8 = arith.constant 0 : index
    %5 = vector.load %arg3[%c0_6, %c0_7, %c0_8] : memref<8x32x32xf32, #tpu.memory_space<vmem>>, vector<8x32x32xf32>
    %cst_9 = arith.constant dense<0.000000e+00> : vector<8x16x32xf32>
    %6 = tpu.matmul %4, %5, %cst_9 {dimension_numbers = #tpu.dot_dimension_numbers<[2], [2], [1], [1], [0, 0, 0, 1, 1, 1], [0], [0]>} : vector<8x16x32xf32>, vector<8x32x32xf32>, vector<8x16x32xf32> -> vector<8x16x32xf32>
    %cst_10 = arith.constant 0.000000e+00 : f32
    %7 = vector.broadcast %cst_10 : f32 to vector<8x16x32xf32>
    %8 = arith.maximumf %6, %7 : vector<8x16x32xf32>
    %c0_11 = arith.constant 0 : index
    %c0_12 = arith.constant 0 : index
    %c0_13 = arith.constant 0 : index
    %9 = vector.load %arg4[%c0_11, %c0_12, %c0_13] : memref<8x1x32xf32, #tpu.memory_space<vmem>>, vector<8x1x32xf32>
    %cst_14 = arith.constant dense<0.000000e+00> : vector<8x16x1xf32>
    %10 = tpu.matmul %8, %9, %cst_14 {dimension_numbers = #tpu.dot_dimension_numbers<[2], [2], [1], [1], [0, 0, 0, 1, 1, 1], [0], [0]>} : vector<8x16x32xf32>, vector<8x1x32xf32>, vector<8x16x1xf32> -> vector<8x16x1xf32>
    %cst_15 = arith.constant 0.000000e+00 : f32
    %11 = vector.broadcast %cst_15 : f32 to vector<8x16x1xf32>
    %12 = arith.maximumf %10, %11 : vector<8x16x1xf32>
    %13 = vector.broadcast %cst_15 : f32 to vector<8x16x1xf32>
    %14 = arith.subf %10, %13 : vector<8x16x1xf32>
    %15 = arith.cmpf one, %14, %14 : vector<8x16x1xf32>
    %16 = vector.broadcast %cst_15 : f32 to vector<8x16x1xf32>
    %17 = arith.addf %10, %16 : vector<8x16x1xf32>
    %18 = math.absf %14 : vector<8x16x1xf32>
    %cst_16 = arith.constant 0.000000e+00 : f32
    %19 = vector.broadcast %cst_16 : f32 to vector<8x16x1xf32>
    %20 = arith.subf %19, %18 : vector<8x16x1xf32>
    %21 = math.exp %20 : vector<8x16x1xf32>
    %22 = math.log1p %21 : vector<8x16x1xf32>
    %23 = arith.addf %12, %22 : vector<8x16x1xf32>
    %24 = arith.select %15, %17, %23 : vector<8x16x1xi1>, vector<8x16x1xf32>
    %25 = vector.shape_cast %24 : vector<8x16x1xf32> to vector<8x16xf32>
    %cst_17 = arith.constant 6.250000e-02 : f32
    %26 = vector.broadcast %cst_17 : f32 to vector<1x16xf32>
    %cst_18 = arith.constant dense<0.000000e+00> : vector<1x8xf32>
    %27 = tpu.matmul %26, %25, %cst_18 {dimension_numbers = #tpu.dot_dimension_numbers<[1], [1], [0], [0], [0, 0, 1, 0], [], []>} : vector<1x16xf32>, vector<8x16xf32>, vector<1x8xf32> -> vector<1x8xf32>
    %28 = vector.shape_cast %27 : vector<1x8xf32> to vector<1x1x8xf32>
    %c0_19 = arith.constant 0 : index
    %c0_20 = arith.constant 0 : index
    %c0_21 = arith.constant 0 : index
    %29 = vector.load %arg5[%c0_19, %c0_20, %c0_21] : memref<1x1x8xf32, #tpu.memory_space<vmem>>, vector<1x1x8xf32>
    tpu.vector_store %arg5[%c0_19, %c0_20, %c0_21], %28 {strides = array<i32>} : memref<1x1x8xf32, #tpu.memory_space<vmem>>, vector<1x1x8xf32>,
    return
  }
  func.func @transform_0(%arg0: i32) -> (i32, i32, i32) {
    %c0_i32 = arith.constant 0 : i32
    %c0_i32_0 = arith.constant 0 : i32
    %c0_i32_1 = arith.constant 0 : i32
    return %arg0, %c0_i32, %c0_i32_0 : i32, i32, i32
  }
  func.func @transform_1(%arg0: i32) -> (i32, i32, i32) {
    %c0_i32 = arith.constant 0 : i32
    %c0_i32_0 = arith.constant 0 : i32
    %c0_i32_1 = arith.constant 0 : i32
    return %arg0, %c0_i32, %c0_i32_0 : i32, i32, i32
  }
  func.func @transform_2(%arg0: i32) -> (i32, i32, i32) {
    %c0_i32 = arith.constant 0 : i32
    %c0_i32_0 = arith.constant 0 : i32
    %c0_i32_1 = arith.constant 0 : i32
    return %arg0, %c0_i32, %c0_i32_0 : i32, i32, i32
  }
  func.func @transform_3(%arg0: i32) -> (i32, i32, i32) {
    %c0_i32 = arith.constant 0 : i32
    %c0_i32_0 = arith.constant 0 : i32
    %c0_i32_1 = arith.constant 0 : i32
    return %arg0, %c0_i32, %c0_i32_0 : i32, i32, i32
  }
  func.func @transform_4(%arg0: i32) -> (i32, i32, i32) {
    %c0_i32 = arith.constant 0 : i32
    %c0_i32_0 = arith.constant 0 : i32
    %c0_i32_1 = arith.constant 0 : i32
    return %arg0, %c0_i32, %c0_i32_0 : i32, i32, i32
  }
}

</mosaic_0001>

<bundles_post_ra>
// kernel: tpu_custom_call.1
= control target key start
LH: loop header
LB: loop body
LE: loop exit
PB: predicated region body
PF: predicated region fallthrough
CT: control target
= control target key end

     0   :  { %vm66_vm0 = vcmask 64512   ;;  %s3689_s0 = inlined_call_operand.vmem [shape: f32[8,16,8], index: 0, kind: input, shape index: {}]   ;;  %s3690_s1 = inlined_call_operand.vmem [shape: f32[8,32,8], index: 1, kind: input, shape index: {}]   ;;  %s3691_s2 = inlined_call_operand.vmem [shape: f32[8,32,32], index: 2, kind: input, shape index: {}]   ;;  %s3692_s3 = inlined_call_operand.vmem [shape: f32[8,1,32], index: 3, kind: input, shape index: {}]   ;;  %s3693_s4 = inlined_call_operand.hbm [shape: f32[1,1,8], index: 4, kind: output, shape index: {}]  }
   0x1   :  { %v34_v0 = vld [vmem:[%s3690_s1] sm:$0xff]  ;;  %v35_v1 = vld [vmem:[%s3690_s1 + $0x8] sm:$0xff]  ;;  %vm2987_vm1 = vmpackc.low %vm66_vm0, %vm66_vm0 }
   0x2   :  { %v38_v2 = vld [vmem:[%s3690_s1 + $0x20] sm:$0xff]  ;;  %v2659_v3 = vpack.c.bf16 %v35_v1, %v34_v0  ;;  %v39_v5 = vld [vmem:[%s3690_s1 + $0x28] sm:$0xff]  ;;  %v36_v6 = vld [vmem:[%s3690_s1 + $0x10] sm:$0xff] }
   0x3   :  { %v2671_v7 = vpack.c.bf16 %v39_v5, %v38_v2  ;;  %v37_v8 = vld [vmem:[%s3690_s1 + $0x18] sm:$0xff]  ;;  %v40_v9 = vld [vmem:[%s3690_s1 + $0x30] sm:$0xff]  ;;  %v18_v13 = vld [vmem:[%s3689_s0] sm:$0xff] }
   0x4   :  { %v41_v10 = vld [vmem:[%s3690_s1 + $0x38] sm:$0xff]  ;;  %2661 = vmatprep.subr.msk.bf16.mxu0 %vm2987_vm1, %v2659_v3  ;;  %v2665_v11 = vpack.c.bf16 %v37_v8, %v36_v6  ;;  %v20_v14 = vld [vmem:[%s3689_s0 + $0x10] sm:$0xff]  ;;  %2486 = vmatprep.mubr.msk.f32.mxu0 %vm66_vm0, %v18_v13  ;;  %v42_v15 = vld [vmem:[%s3690_s1 + $0x40] sm:$0xff] }
   0x5   :  { %v2677_v12 = vpack.c.bf16 %v41_v10, %v40_v9  ;;  %2673 = vmatprep.subr.msk.bf16.mxu1 %vm2987_vm1, %v2671_v7  ;;  %2664 = vmatpush3.bf16.xpose.msk.msra.mxu0 %vm2987_vm1, %v2659_v3  ;;  %v43_v16 = vld [vmem:[%s3690_s1 + $0x48] sm:$0xff]  ;;  %v46_v17 = vld [vmem:[%s3690_s1 + $0x60] sm:$0xff]  ;;  %v44_v21 = vld [vmem:[%s3690_s1 + $0x50] sm:$0xff] }
   0x6   :  { %2676 = vmatpush3.bf16.xpose.msk.msra.mxu1 %vm2987_vm1, %v2671_v7  ;;  %2667 = vmatprep.subr.msk.bf16.mxu0 %vm2987_vm1, %v2665_v11  ;;  %v47_v18 = vld [vmem:[%s3690_s1 + $0x68] sm:$0xff]  ;;  %v2683_v19 = vpack.c.bf16 %v43_v16, %v42_v15  ;;  %v45_v22 = vld [vmem:[%s3690_s1 + $0x58] sm:$0xff]  ;;  %v48_v23 = vld [vmem:[%s3690_s1 + $0x70] sm:$0xff] }
   0x7   :  { %2679 = vmatprep.subr.msk.bf16.mxu1 %vm2987_vm1, %v2677_v12  ;;  %2497 = vmatprep.mubr.msk.f32.mxu1 %vm66_vm0, %v20_v14  ;;  %v2695_v20 = vpack.c.bf16 %v47_v18, %v46_v17  ;;  %v49_v24 = vld [vmem:[%s3690_s1 + $0x78] sm:$0xff]  ;;  %v19_v25 = vld [vmem:[%s3689_s0 + $0x8] sm:$0xff]  ;;  %v2689_v27 = vpack.c.bf16 %v45_v22, %v44_v21  ;;  %v22_v29 = vld [vmem:[%s3689_s0 + $0x20] sm:$0xff] }
   0x8   :  { %v21_v26 = vld [vmem:[%s3689_s0 + $0x18] sm:$0xff]  ;;  %v2701_v28 = vpack.c.bf16 %v49_v24, %v48_v23 }
   0xd   :  { %2670 = vmatpush3.bf16.xpose.msk.msra.mxu0 %vm2987_vm1, %v2665_v11 }
   0xe   :  { %2682 = vmatpush3.bf16.xpose.msk.msra.mxu1 %vm2987_vm1, %v2677_v12  ;;  %2685 = vmatprep.subr.msk.bf16.mxu0 %vm2987_vm1, %v2683_v19 }
   0xf   :  { %2697 = vmatprep.subr.msk.bf16.mxu1 %vm2987_vm1, %v2695_v20 }
  0x14   :  { %2487 = vmatmul.mubr.msk.f32.vlgmr.msra.gmra.mrb[0].mxu0 %vm66_vm0, %v19_v25 }
  0x15   :  { %9 = vsyncpa [#allocation3], 0  ;;  %2498 = vmatmul.mubr.msk.f32.vlgmr.msra.gmra.mrb[0].mxu1 %vm66_vm0, %v21_v26  ;;  %2688 = vmatpush3.bf16.xpose.msk.msra.mxu0 %vm2987_vm1, %v2683_v19  ;;  %v24_v30 = vld [vmem:[%s3689_s0 + $0x30] sm:$0xff]  ;;  %v50_v31 = vld [vmem:[%s3690_s1 + $0x80] sm:$0xff]  ;;  %vm859_vm2 = vcmask 261120  }
  0x16   :  { %2700 = vmatpush3.bf16.xpose.msk.msra.mxu1 %vm2987_vm1, %v2695_v20  ;;  %2691 = vmatprep.subr.msk.bf16.mxu0 %vm2987_vm1, %v2689_v27  ;;  %v51_v32 = vld [vmem:[%s3690_s1 + $0x88] sm:$0xff]  ;;  %v54_v33 = vld [vmem:[%s3690_s1 + $0xa0] sm:$0xff]  ;;  %v52_v37 = vld [vmem:[%s3690_s1 + $0x90] sm:$0xff] }
  0x17   :  { %2703 = vmatprep.subr.msk.bf16.mxu1 %vm2987_vm1, %v2701_v28  ;;  %2508 = vmatprep.mubr.msk.f32.mxu0 %vm66_vm0, %v22_v29  ;;  %v55_v34 = vld [vmem:[%s3690_s1 + $0xa8] sm:$0xff]  ;;  %v2707_v35 = vpack.c.bf16 %v51_v32, %v50_v31  ;;  %v53_v38 = vld [vmem:[%s3690_s1 + $0x98] sm:$0xff]  ;;  %v56_v39 = vld [vmem:[%s3690_s1 + $0xb0] sm:$0xff] }
  0x18   :  { %2519 = vmatprep.mubr.msk.f32.mxu1 %vm66_vm0, %v24_v30  ;;  %v2719_v36 = vpack.c.bf16 %v55_v34, %v54_v33  ;;  %v57_v40 = vld [vmem:[%s3690_s1 + $0xb8] sm:$0xff]  ;;  %v23_v41 = vld [vmem:[%s3689_s0 + $0x28] sm:$0xff]  ;;  %v2713_v43 = vpack.c.bf16 %v53_v38, %v52_v37  ;;  %v26_v45 = vld [vmem:[%s3689_s0 + $0x40] sm:$0xff] }
  0x19   :  { %v25_v42 = vld [vmem:[%s3689_s0 + $0x38] sm:$0xff]  ;;  %v2725_v44 = vpack.c.bf16 %v57_v40, %v56_v39  ;;  %v28_v46 = vld [vmem:[%s3689_s0 + $0x50] sm:$0xff]  ;;  %v58_v47 = vld [vmem:[%s3690_s1 + $0xc0] sm:$0xff] }
  0x1a   :  { %v59_v48 = vld [vmem:[%s3690_s1 + $0xc8] sm:$0xff]  ;;  %v62_v49 = vld [vmem:[%s3690_s1 + $0xe0] sm:$0xff]  ;;  %v60_v53 = vld [vmem:[%s3690_s1 + $0xd0] sm:$0xff] }
  0x1b   :  { %v63_v50 = vld [vmem:[%s3690_s1 + $0xe8] sm:$0xff]  ;;  %v2731_v51 = vpack.c.bf16 %v59_v48, %v58_v47  ;;  %v61_v54 = vld [vmem:[%s3690_s1 + $0xd8] sm:$0xff]  ;;  %v64_v55 = vld [vmem:[%s3690_s1 + $0xf0] sm:$0xff] }
  0x1c   :  { %v2743_v52 = vpack.c.bf16 %v63_v50, %v62_v49  ;;  %v65_v56 = vld [vmem:[%s3690_s1 + $0xf8] sm:$0xff]  ;;  %v27_v57 = vld [vmem:[%s3689_s0 + $0x48] sm:$0xff]  ;;  %v2737_v59 = vpack.c.bf16 %v61_v54, %v60_v53  ;;  %v30_v61 = vld [vmem:[%s3689_s0 + $0x60] sm:$0xff] }
  0x1d   :  { %2694 = vmatpush3.bf16.xpose.msk.msra.mxu0 %vm2987_vm1, %v2689_v27  ;;  %v29_v58 = vld [vmem:[%s3689_s0 + $0x58] sm:$0xff]  ;;  %v2749_v60 = vpack.c.bf16 %v65_v56, %v64_v55  ;;  %v32_v62 = vld [vmem:[%s3689_s0 + $0x70] sm:$0xff]  ;;  %v827_v63 = vld [vmem:[%s3691_s2] sm:$0xff] }
  0x1e   :  { %2706 = vmatpush3.bf16.xpose.msk.msra.mxu1 %vm2987_vm1, %v2701_v28  ;;  %2709 = vmatprep.subr.msk.bf16.mxu0 %vm2987_vm1, %v2707_v35  ;;  %v828_v0 = vld [vmem:[%s3691_s2 + $0x8] sm:$0xff]  ;;  %v831_v1 = vld [vmem:[%s3691_s2 + $0x20] sm:$0xff]  ;;  %vm3208_vm3 = vmpackc.low %vm859_vm2, %vm859_vm2 }
  0x1f   :  { %2721 = vmatprep.subr.msk.bf16.mxu1 %vm2987_vm1, %v2719_v36  ;;  %v832_v2 = vld [vmem:[%s3691_s2 + $0x28] sm:$0xff]  ;;  %v2755_v3 = vpack.c.bf16 %v828_v0, %v827_v63  ;;  %v829_v7 = vld [vmem:[%s3691_s2 + $0x10] sm:$0xff]  ;;  %v830_v8 = vld [vmem:[%s3691_s2 + $0x18] sm:$0xff] }
  0x20   :  { %v2767_v6 = vpack.c.bf16 %v832_v2, %v831_v1  ;;  %v833_v9 = vld [vmem:[%s3691_s2 + $0x30] sm:$0xff]  ;;  %v834_v4 = vld [vmem:[%s3691_s2 + $0x38] sm:$0xff]  ;;  %v31_v10 = vld [vmem:[%s3689_s0 + $0x68] sm:$0xff]  ;;  %v2761_v12 = vpack.c.bf16 %v830_v8, %v829_v7 }
  0x21   :  { %v33_v11 = vld [vmem:[%s3689_s0 + $0x78] sm:$0xff]  ;;  %v2773_v13 = vpack.c.bf16 %v834_v4, %v833_v9  ;;  %v835_v14 = vld [vmem:[%s3691_s2 + $0x40] sm:$0xff]  ;;  %v836_v15 = vld [vmem:[%s3691_s2 + $0x48] sm:$0xff] }
  0x22   :  { %v2779_v16 = vpack.c.bf16 %v836_v15, %v835_v14  ;;  %v839_v17 = vld [vmem:[%s3691_s2 + $0x60] sm:$0xff]  ;;  %v840_v18 = vld [vmem:[%s3691_s2 + $0x68] sm:$0xff]  ;;  %v837_v21 = vld [vmem:[%s3691_s2 + $0x50] sm:$0xff] }
  0x23   :  { %v2791_v19 = vpack.c.bf16 %v840_v18, %v839_v17  ;;  %v838_v22 = vld [vmem:[%s3691_s2 + $0x58] sm:$0xff]  ;;  %v841_v26 = vld [vmem:[%s3691_s2 + $0x70] sm:$0xff]  ;;  %v843_v34 = vld [vmem:[%s3691_s2 + $0x80] sm:$0xff] }
  0x24   :  { %2509 = vmatmul.mubr.msk.f32.vlgmr.msra.gmra.mrb[2].mxu0 %vm66_vm0, %v23_v41  ;;  %v842_v27 = vld [vmem:[%s3691_s2 + $0x78] sm:$0xff]  ;;  %v2785_v32 = vpack.c.bf16 %v838_v22, %v837_v21  ;;  %v848_v37 = vld [vmem:[%s3691_s2 + $0xa8] sm:$0xff]  ;;  %v845_v41 = vld [vmem:[%s3691_s2 + $0x90] sm:$0xff] }
  0x25   :  { %2712 = vmatpush3.bf16.xpose.msk.msra.mxu0 %vm2987_vm1, %v2707_v35  ;;  %2520 = vmatmul.mubr.msk.f32.vlgmr.msra.gmra.mrb[2].mxu1 %vm66_vm0, %v25_v42  ;;  %v2797_v33 = vpack.c.bf16 %v842_v27, %v841_v26  ;;  %v844_v35 = vld [vmem:[%s3691_s2 + $0x88] sm:$0xff]  ;;  %v846_v42 = vld [vmem:[%s3691_s2 + $0x98] sm:$0xff]  ;;  %v851_v54 = vld [vmem:[%s3691_s2 + $0xc0] sm:$0xff] }
  0x26   :  { %2724 = vmatpush3.bf16.xpose.msk.msra.mxu1 %vm2987_vm1, %v2719_v36  ;;  %2715 = vmatprep.subr.msk.bf16.mxu0 %vm2987_vm1, %v2713_v43  ;;  %v847_v36 = vld [vmem:[%s3691_s2 + $0xa0] sm:$0xff]  ;;  %v2803_v38 = vpack.c.bf16 %v844_v35, %v843_v34  ;;  %v850_v47 = vld [vmem:[%s3691_s2 + $0xb8] sm:$0xff]  ;;  %v852_v55 = vld [vmem:[%s3691_s2 + $0xc8] sm:$0xff] }
  0x27   :  { %2727 = vmatprep.subr.msk.bf16.mxu1 %vm2987_vm1, %v2725_v44  ;;  %2530 = vmatprep.mubr.msk.f32.mxu0 %vm66_vm0, %v26_v45  ;;  %v2815_v39 = vpack.c.bf16 %v848_v37, %v847_v36  ;;  %v855_v56 = vld [vmem:[%s3691_s2 + $0xe0] sm:$0xff]  ;;  %v857_v2 = vld [vmem:[%s3691_s2 + $0xf0] sm:$0xff] }
  0x28   :  { %2541 = vmatprep.mubr.msk.f32.mxu1 %vm66_vm0, %v28_v46  ;;  %v849_v46 = vld [vmem:[%s3691_s2 + $0xb0] sm:$0xff]  ;;  %v2370_v5 = vld [vmem:[%s3692_s3] ss:$0 sm:$0xff]  ;;  %v2372_v37 = vld [vmem:[%s3692_s3 + $0x2] ss:$0 sm:$0xff] }
  0x29   :  { %v2821_v53 = vpack.c.bf16 %v850_v47, %v849_v46 }
  0x2d   :  { %2718 = vmatpush3.bf16.xpose.msk.msra.mxu0 %vm2987_vm1, %v2713_v43 }
  0x2e   :  { %2730 = vmatpush3.bf16.xpose.msk.msra.mxu1 %vm2987_vm1, %v2725_v44  ;;  %2733 = vmatprep.subr.msk.bf16.mxu0 %vm2987_vm1, %v2731_v51 }
  0x2f   :  { %2745 = vmatprep.subr.msk.bf16.mxu1 %vm2987_vm1, %v2743_v52 }
  0x34   :  { %2531 = vmatmul.mubr.msk.f32.vlgmr.msra.gmra.mrb[4].mxu0 %vm66_vm0, %v27_v57  ;;  %v856_v57 = vld [vmem:[%s3691_s2 + $0xe8] sm:$0xff] }
  0x35   :  { %2736 = vmatpush3.bf16.xpose.msk.msra.mxu0 %vm2987_vm1, %v2731_v51  ;;  %2542 = vmatmul.mubr.msk.f32.vlgmr.msra.gmra.mrb[4].mxu1 %vm66_vm0, %v29_v58  ;;  %v2827_v58 = vpack.c.bf16 %v852_v55, %v851_v54  ;;  %v2374_v55 = vld [vmem:[%s3692_s3 + $0x4] ss:$0 sm:$0xff] }
  0x36   :  { %2748 = vmatpush3.bf16.xpose.msk.msra.mxu1 %vm2987_vm1, %v2743_v52  ;;  %2739 = vmatprep.subr.msk.bf16.mxu0 %vm2987_vm1, %v2737_v59  ;;  %v2809_v52 = vpack.c.bf16 %v846_v42, %v845_v41  ;;  %v2373_v41 = vld [vmem:[%s3692_s3 + $0x3] ss:$0 sm:$0xff] }
  0x37   :  { %2751 = vmatprep.subr.msk.bf16.mxu1 %vm2987_vm1, %v2749_v60  ;;  %2552 = vmatprep.mubr.msk.f32.mxu0 %vm66_vm0, %v30_v61  ;;  %v853_v61 = vld [vmem:[%s3691_s2 + $0xd0] sm:$0xff] }
  0x38   :  { %2563 = vmatprep.mubr.msk.f32.mxu1 %vm66_vm0, %v32_v62  ;;  %v854_v62 = vld [vmem:[%s3691_s2 + $0xd8] sm:$0xff] }
  0x39   :  { %v2833_v4 = vpack.c.bf16 %v854_v62, %v853_v61 }
  0x3d   :  { %2742 = vmatpush3.bf16.xpose.msk.msra.mxu0 %vm2987_vm1, %v2737_v59  ;;  %v2839_v59 = vpack.c.bf16 %v856_v57, %v855_v56 }
  0x3e   :  { %2754 = vmatpush3.bf16.xpose.msk.msra.mxu1 %vm2987_vm1, %v2749_v60  ;;  %2757 = vmatprep.subr.msk.bf16.mxu0 %vm3208_vm3, %v2755_v3 }
  0x3f   :  { %2769 = vmatprep.subr.msk.bf16.mxu1 %vm3208_vm3, %v2767_v6 }
  0x44   :  { %2553 = vmatmul.mubr.msk.f32.vlgmr.msra.gmra.mrb[6].mxu0 %vm66_vm0, %v31_v10 }
  0x45   :  { %2564 = vmatmul.mubr.msk.f32.vlgmr.msra.gmra.mrb[6].mxu1 %vm66_vm0, %v33_v11  ;;  %2760 = vmatpush3.bf16.xpose.msk.msra.mxu0 %vm3208_vm3, %v2755_v3  ;;  %v858_v3 = vld [vmem:[%s3691_s2 + $0xf8] sm:$0xff] }
  0x46   :  { %2772 = vmatpush3.bf16.xpose.msk.msra.mxu1 %vm3208_vm3, %v2767_v6  ;;  %2763 = vmatprep.subr.msk.bf16.mxu0 %vm3208_vm3, %v2761_v12  ;;  %v2845_v10 = vpack.c.bf16 %v858_v3, %v857_v2 }
  0x47   :  { %2775 = vmatprep.subr.msk.bf16.mxu1 %vm3208_vm3, %v2773_v13 }
  0x4d   :  { %2766 = vmatpush3.bf16.xpose.msk.msra.mxu0 %vm3208_vm3, %v2761_v12 }
  0x4e   :  { %2778 = vmatpush3.bf16.xpose.msk.msra.mxu1 %vm3208_vm3, %v2773_v13  ;;  %2781 = vmatprep.subr.msk.bf16.mxu0 %vm3208_vm3, %v2779_v16 }
  0x4f   :  { %2793 = vmatprep.subr.msk.bf16.mxu1 %vm3208_vm3, %v2791_v19 }
  0xe7   :  { %v2488_v20 = vpop.f32.mrb[0].mxu0 }
  0xe8   :  { %v812_v23 = vmax.f32 %v2488_v20, 0.0  ;;  %v2499_v24 = vpop.f32.mrb[0].mxu1  ;;  %v151_v25 = vpop.f32.mrb[1].mxu0 }
  0xe9   :  { %v814_v28 = vmax.f32 %v2499_v24, 0.0  ;;  %v811_v29 = vmax.f32 %v151_v25, 0.0  ;;  %v244_v30 = vpop.f32.mrb[1].mxu1 }
  0xea   :  { %v813_v31 = vmax.f32 %v244_v30, 0.0 }
  0xeb   :  { %2574 = vmatprep.mubr.msk.f32.mxu0 %vm859_vm2, %v811_v29 }
  0xec   :  { %2585 = vmatprep.mubr.msk.f32.mxu1 %vm859_vm2, %v813_v31  ;;  %2575 = vmatmul.mubr.msk.f32.vlgmr.msra.gmra.mrb[8].mxu0 %vm859_vm2, %v812_v23  ;;  %v2371_v23 = vld [vmem:[%s3692_s3 + $0x1] ss:$0 sm:$0xff] }
  0xed   :  { %2586 = vmatmul.mubr.msk.f32.vlgmr.msra.gmra.mrb[8].mxu1 %vm859_vm2, %v814_v28  ;;  %2784 = vmatpush3.bf16.xpose.msk.msra.mxu0 %vm3208_vm3, %v2779_v16 }
  0xee   :  { %2796 = vmatpush3.bf16.xpose.msk.msra.mxu1 %vm3208_vm3, %v2791_v19  ;;  %2787 = vmatprep.subr.msk.bf16.mxu0 %vm3208_vm3, %v2785_v32 }
  0xef   :  { %2799 = vmatprep.subr.msk.bf16.mxu1 %vm3208_vm3, %v2797_v33 }
  0xf5   :  { %2790 = vmatpush3.bf16.xpose.msk.msra.mxu0 %vm3208_vm3, %v2785_v32 }
  0xf6   :  { %2802 = vmatpush3.bf16.xpose.msk.msra.mxu1 %vm3208_vm3, %v2797_v33  ;;  %2805 = vmatprep.subr.msk.bf16.mxu0 %vm3208_vm3, %v2803_v38 }
  0xf7   :  { %v2510_v40 = vpop.f32.mrb[2].mxu0  ;;  %2817 = vmatprep.subr.msk.bf16.mxu1 %vm3208_vm3, %v2815_v39 }
  0xf8   :  { %v816_v43 = vmax.f32 %v2510_v40, 0.0  ;;  %v337_v44 = vpop.f32.mrb[3].mxu0  ;;  %v2521_v45 = vpop.f32.mrb[2].mxu1 }
  0xf9   :  { %v815_v48 = vmax.f32 %v337_v44, 0.0  ;;  %v818_v49 = vmax.f32 %v2521_v45, 0.0  ;;  %v430_v50 = vpop.f32.mrb[3].mxu1 }
  0xfa   :  { %v817_v51 = vmax.f32 %v430_v50, 0.0 }
  0xfb   :  { %2596 = vmatprep.mubr.msk.f32.mxu0 %vm859_vm2, %v815_v48 }
  0xfc   :  { %2597 = vmatmul.mubr.msk.f32.vlgmr.msra.gmra.mrb[10].mxu0 %vm859_vm2, %v816_v43  ;;  %2607 = vmatprep.mubr.msk.f32.mxu1 %vm859_vm2, %v817_v51 }
  0xfd   :  { %2808 = vmatpush3.bf16.xpose.msk.msra.mxu0 %vm3208_vm3, %v2803_v38  ;;  %2608 = vmatmul.mubr.msk.f32.vlgmr.msra.gmra.mrb[10].mxu1 %vm859_vm2, %v818_v49 }
  0xfe   :  { %2820 = vmatpush3.bf16.xpose.msk.msra.mxu1 %vm3208_vm3, %v2815_v39  ;;  %2811 = vmatprep.subr.msk.bf16.mxu0 %vm3208_vm3, %v2809_v52 }
  0xff   :  { %2823 = vmatprep.subr.msk.bf16.mxu1 %vm3208_vm3, %v2821_v53 }
 0x105   :  { %2814 = vmatpush3.bf16.xpose.msk.msra.mxu0 %vm3208_vm3, %v2809_v52 }
 0x106   :  { %2826 = vmatpush3.bf16.xpose.msk.msra.mxu1 %vm3208_vm3, %v2821_v53  ;;  %2829 = vmatprep.subr.msk.bf16.mxu0 %vm3208_vm3, %v2827_v58 }
 0x107   :  { %v2532_v60 = vpop.f32.mrb[4].mxu0  ;;  %2841 = vmatprep.subr.msk.bf16.mxu1 %vm3208_vm3, %v2839_v59 }
 0x108   :  { %v820_v63 = vmax.f32 %v2532_v60, 0.0  ;;  %v523_v0 = vpop.f32.mrb[5].mxu0  ;;  %v2543_v1 = vpop.f32.mrb[4].mxu1 }
 0x109   :  { %v819_v6 = vmax.f32 %v523_v0, 0.0  ;;  %v822_v7 = vmax.f32 %v2543_v1, 0.0  ;;  %v616_v8 = vpop.f32.mrb[5].mxu1 }
 0x10a   :  { %v821_v9 = vmax.f32 %v616_v8, 0.0 }
 0x10b   :  { %2618 = vmatprep.mubr.msk.f32.mxu0 %vm859_vm2, %v819_v6 }
 0x10c   :  { %2619 = vmatmul.mubr.msk.f32.vlgmr.msra.gmra.mrb[12].mxu0 %vm859_vm2, %v820_v63  ;;  %2629 = vmatprep.mubr.msk.f32.mxu1 %vm859_vm2, %v821_v9 }
 0x10d   :  { %2832 = vmatpush3.bf16.xpose.msk.msra.mxu0 %vm3208_vm3, %v2827_v58  ;;  %2630 = vmatmul.mubr.msk.f32.vlgmr.msra.gmra.mrb[12].mxu1 %vm859_vm2, %v822_v7 }
 0x10e   :  { %2844 = vmatpush3.bf16.xpose.msk.msra.mxu1 %vm3208_vm3, %v2839_v59  ;;  %2835 = vmatprep.subr.msk.bf16.mxu0 %vm3208_vm3, %v2833_v4  ;;  %v2375_v59 = vld [vmem:[%s3692_s3 + $0x5] ss:$0 sm:$0xff] }
 0x10f   :  { %2847 = vmatprep.subr.msk.bf16.mxu1 %vm3208_vm3, %v2845_v10 }
 0x115   :  { %2838 = vmatpush3.bf16.xpose.msk.msra.mxu0 %vm3208_vm3, %v2833_v4 }
 0x116   :  { %2850 = vmatpush3.bf16.xpose.msk.msra.mxu1 %vm3208_vm3, %v2845_v10  ;;  %v2376_v10 = vld [vmem:[%s3692_s3 + $0x6] ss:$0 sm:$0xff] }
 0x117   :  { %v2554_v11 = vpop.f32.mrb[6].mxu0 }
 0x118   :  { %v709_v12 = vpop.f32.mrb[7].mxu0  ;;  %v2565_v13 = vpop.f32.mrb[6].mxu1  ;;  %v824_v17 = vmax.f32 %v2554_v11, 0.0 }
 0x119   :  { %v823_v14 = vmax.f32 %v709_v12, 0.0  ;;  %v826_v15 = vmax.f32 %v2565_v13, 0.0  ;;  %v802_v16 = vpop.f32.mrb[7].mxu1 }
 0x11a   :  { %v825_v18 = vmax.f32 %v802_v16, 0.0 }
 0x11b   :  { %2640 = vmatprep.mubr.msk.f32.mxu0 %vm859_vm2, %v823_v14 }
 0x11c   :  { %2641 = vmatmul.mubr.msk.f32.vlgmr.msra.gmra.mrb[14].mxu0 %vm859_vm2, %v824_v17  ;;  %2651 = vmatprep.mubr.msk.f32.mxu1 %vm859_vm2, %v825_v18  ;;  %v2377_v17 = vld [vmem:[%s3692_s3 + $0x7] ss:$0 sm:$0xff]  ;;  %s2950_s3 = smov [#allocation2]  }
 0x11d   :  { %2652 = vmatmul.mubr.msk.f32.vlgmr.msra.gmra.mrb[14].mxu1 %vm859_vm2, %v826_v15  ;;  %s2266_s27 = sshll.u32 %s2950_s3, 4  ;;  %s2267_s27 = int_to_ptr.vmem [resolvable:$true] %s2266_s27 }
 0x11e   :  { %s2922_s28 = scalar_lea.vmem %s2267_s27, 16  ;;  %s2926_s29 = scalar_lea.vmem %s2267_s27, 32 }
 0x11f   :  { %p2923_p0 = scmp.ne.s32.totalorder %s2267_s27, %s2922_s28  ;;  %p2927_p1 = scmp.lt.s32.totalorder %s2267_s27, %s2267_s27 }
 0x120   :  { %p2928_p2 = scmp.lt.s32.totalorder %s2926_s29, %s2922_s28 }
 0x122   :  { %p2929_p3 = por %p2928_p2, %p2927_p1 }
 0x124   :  { %p2930_p4 = pnand %p2929_p3, %p2923_p0 }
 0x1bf   :  { %v2576_v19 = vpop.f32.mrb[8].mxu0 }
 0x1c0   :  { %v1605_v20 = vmax.f32 %v2576_v19, 0.0  ;;  %v2587_v21 = vpop.f32.mrb[8].mxu1  ;;  %v944_v22 = vpop.f32.mrb[9].mxu0 }
 0x1c1   :  { %v1607_v24 = vmax.f32 %v2587_v21, 0.0  ;;  %v1604_v25 = vmax.f32 %v944_v22, 0.0  ;;  %v1037_v26 = vpop.f32.mrb[9].mxu1 }
 0x1c2   :  { %v1606_v27 = vmax.f32 %v1037_v26, 0.0  ;;  %v1635_v28 = vmul.f32 %v2370_v5, %v1605_v20 }
 0x1c3   :  { %v1649_v29 = vmul.f32 %v2371_v23, %v1607_v24  ;;  %v1634_v32 = vmul.f32 %v2370_v5, %v1604_v25  ;;  %v2946_v24 = vmov 0  }
 0x1c4   :  { %v1639_v30 = vsel %vm859_vm2, %v1635_v28, 0.0  ;;  %v1648_v31 = vmul.f32 %v2371_v23, %v1606_v27  ;;  %2856 = vset.pattern.permute.xlu1 %v2946_v24  ;;  %2857 = vset.pattern.permute.xlu0 %v2946_v24 }
 0x1c5   :  { %v1653_v33 = vsel %vm859_vm2, %v1649_v29, 0.0  ;;  %1640 = vadd.xlane.f32.xlu0 %v1639_v30  ;;  %v1636_v35 = vsel %vm859_vm2, %v1634_v32, 0.0 }
 0x1c6   :  { %1654 = vadd.xlane.f32.xlu1 %v1653_v33  ;;  %v1650_v34 = vsel %vm859_vm2, %v1648_v31, 0.0 }
 0x1c9   :  { %1637 = vadd.xlane.f32.xlu0 %v1636_v35 }
 0x1ca   :  { %1651 = vadd.xlane.f32.xlu1 %v1650_v34 }
 0x1cf   :  { %v2598_v36 = vpop.f32.mrb[10].mxu0 }
 0x1d0   :  { %v1609_v38 = vmax.f32 %v2598_v36, 0.0  ;;  %v1130_v39 = vpop.f32.mrb[11].mxu0  ;;  %v2609_v40 = vpop.f32.mrb[10].mxu1 }
 0x1d1   :  { %v1608_v42 = vmax.f32 %v1130_v39, 0.0  ;;  %v1611_v43 = vmax.f32 %v2609_v40, 0.0  ;;  %v1223_v44 = vpop.f32.mrb[11].mxu1 }
 0x1d2   :  { %v1610_v45 = vmax.f32 %v1223_v44, 0.0  ;;  %v1663_v46 = vmul.f32 %v2372_v37, %v1609_v38 }
 0x1d3   :  { %v1662_v47 = vmul.f32 %v2372_v37, %v1608_v42  ;;  %v1677_v48 = vmul.f32 %v2373_v41, %v1611_v43 }
 0x1d4   :  { %v1667_v49 = vsel %vm859_vm2, %v1663_v46, 0.0  ;;  %v1676_v51 = vmul.f32 %v2373_v41, %v1610_v45 }
 0x1d5   :  { %1668 = vadd.xlane.f32.xlu1 %v1667_v49  ;;  %v1664_v50 = vsel %vm859_vm2, %v1662_v47, 0.0  ;;  %v1681_v52 = vsel %vm859_vm2, %v1677_v48, 0.0 }
 0x1d6   :  { %1665 = vadd.xlane.f32.xlu0 %v1664_v50  ;;  %v1678_v53 = vsel %vm859_vm2, %v1676_v51, 0.0 }
 0x1d9   :  { %1682 = vadd.xlane.f32.xlu1 %v1681_v52 }
 0x1da   :  { %1679 = vadd.xlane.f32.xlu0 %v1678_v53 }
 0x1df   :  { %v2620_v54 = vpop.f32.mrb[12].mxu0 }
 0x1e0   :  { %v1613_v56 = vmax.f32 %v2620_v54, 0.0  ;;  %v1316_v57 = vpop.f32.mrb[13].mxu0  ;;  %v2631_v58 = vpop.f32.mrb[12].mxu1 }
 0x1e1   :  { %v1612_v60 = vmax.f32 %v1316_v57, 0.0  ;;  %v1615_v61 = vmax.f32 %v2631_v58, 0.0  ;;  %v1409_v62 = vpop.f32.mrb[13].mxu1 }
 0x1e2   :  { %v1614_v63 = vmax.f32 %v1409_v62, 0.0  ;;  %v1691_v0 = vmul.f32 %v2374_v55, %v1613_v56 }
 0x1e3   :  { %v1690_v1 = vmul.f32 %v2374_v55, %v1612_v60  ;;  %v1705_v2 = vmul.f32 %v2375_v59, %v1615_v61 }
 0x1e4   :  { %v1695_v3 = vsel %vm859_vm2, %v1691_v0, 0.0  ;;  %v1704_v7 = vmul.f32 %v2375_v59, %v1614_v63 }
 0x1e5   :  { %1696 = vadd.xlane.f32.xlu1 %v1695_v3  ;;  %v1692_v6 = vsel %vm859_vm2, %v1690_v1, 0.0  ;;  %v1709_v8 = vsel %vm859_vm2, %v1705_v2, 0.0 }
 0x1e6   :  { %1693 = vadd.xlane.f32.xlu0 %v1692_v6  ;;  %v1706_v9 = vsel %vm859_vm2, %v1704_v7, 0.0 }
 0x1e9   :  { %1710 = vadd.xlane.f32.xlu1 %v1709_v8 }
 0x1ea   :  { %1707 = vadd.xlane.f32.xlu0 %v1706_v9 }
 0x1ef   :  { %v2642_v4 = vpop.f32.mrb[14].mxu0 }
 0x1f0   :  { %v1617_v11 = vmax.f32 %v2642_v4, 0.0  ;;  %v1502_v12 = vpop.f32.mrb[15].mxu0  ;;  %v2653_v13 = vpop.f32.mrb[14].mxu1 }
 0x1f1   :  { %v1616_v14 = vmax.f32 %v1502_v12, 0.0  ;;  %v1619_v15 = vmax.f32 %v2653_v13, 0.0  ;;  %v1595_v16 = vpop.f32.mrb[15].mxu1 }
 0x1f2   :  { %v1618_v18 = vmax.f32 %v1595_v16, 0.0  ;;  %v1719_v19 = vmul.f32 %v2376_v10, %v1617_v11 }
 0x1f3   :  { %v1718_v5 = vmul.f32 %v2376_v10, %v1616_v14  ;;  %v1733_v21 = vmul.f32 %v2377_v17, %v1619_v15 }
 0x1f4   :  { %v1723_v20 = vsel %vm859_vm2, %v1719_v19, 0.0  ;;  %v1732_v22 = vmul.f32 %v2377_v17, %v1618_v18 }
 0x1f5   :  { %1724 = vadd.xlane.f32.xlu1 %v1723_v20  ;;  %v1720_v23 = vsel %vm859_vm2, %v1718_v5, 0.0  ;;  %v1737_v25 = vsel %vm859_vm2, %v1733_v21, 0.0 }
 0x1f6   :  { %1721 = vadd.xlane.f32.xlu0 %v1720_v23  ;;  %v1734_v26 = vsel %vm859_vm2, %v1732_v22, 0.0 }
 0x1f9   :  { %1738 = vadd.xlane.f32.xlu1 %v1737_v25 }
 0x1fa   :  { %1735 = vadd.xlane.f32.xlu0 %v1734_v26 }
 0x252   :  { %v3428_v27 = vpop.xlane.xlu0 %1640 }
 0x253   :  { %v3430_v28 = vpop.xlane.xlu1 %1654  ;;  %v1789_v29 = vand.u32 2147483647, %v3428_v27  ;;  %v1741_v11 = vmax.f32 %v3428_v27, 0.0  ;;  %vm1757_vm4 = vcmp.ne.f32.partialorder %v3428_v27, %v3428_v27 }
 0x254   :  { %v1791_v30 = vand.u32 2147483647, %v3430_v28  ;;  %v1743_v14 = vmax.f32 %v3430_v28, 0.0  ;;  %vm1759_vm7 = vcmp.ne.f32.partialorder %v3430_v28, %v3430_v28 }
 0x255   :  { %v1805_v31 = vsub.f32 0.0, %v1789_v29 }
 0x256   :  { %v1807_v32 = vsub.f32 0.0, %v1791_v30  ;;  %v3434_v33 = vpop.xlane.xlu0 %1637 }
 0x257   :  { %v1822_v34 = vmul.f32 1.442695, %v1805_v31  ;;  %v3436_v35 = vpop.xlane.xlu1 %1651  ;;  %v1788_v36 = vand.u32 2147483647, %v3434_v33  ;;  %vm1756_vm10 = vcmp.ne.f32.partialorder %v3434_v33, %v3434_v33 }
 0x258   :  { %v1826_v37 = vmul.f32 1.442695, %v1807_v32  ;;  %v1790_v38 = vand.u32 2147483647, %v3436_v35  ;;  %vm1758_vm11 = vcmp.ne.f32.partialorder %v3436_v35, %v3436_v35 }
 0x259   :  { %2858 = vpow2.f32 %v1822_v34  ;;  %v1804_v39 = vsub.f32 0.0, %v1788_v36 }
 0x25a   :  { %2860 = vpow2.f32 %v1826_v37  ;;  %v1806_v40 = vsub.f32 0.0, %v1790_v38 }
 0x25b   :  { %v1820_v41 = vmul.f32 1.442695, %v1804_v39 }
 0x25c   :  { %v1824_v42 = vmul.f32 1.442695, %v1806_v40 }
 0x25d   :  { %2862 = vpow2.f32 %v1820_v41 }
 0x25e   :  { %2864 = vpow2.f32 %v1824_v42 }
 0x262   :  { %v3440_v43 = vpop.xlane.xlu1 %1668 }
 0x263   :  { %v2859_v44 = vpop.eup %2858  ;;  %v1793_v45 = vand.u32 2147483647, %v3440_v43  ;;  %v3443_v46 = vpop.xlane.xlu0 %1665  ;;  %vm1761_vm12 = vcmp.ne.f32.partialorder %v3440_v43, %v3440_v43 }
 0x264   :  { %v2861_v47 = vpop.eup %2860  ;;  %v1792_v48 = vand.u32 2147483647, %v3443_v46  ;;  %v1861_v49 = vadd.f32 1.0, %v2859_v44  ;;  %v1864_v62 = vmul.f32 -0.5, %v2859_v44  ;;  %v1867_v7 = vand.u32 2147483647, %v2859_v44 }
 0x265   :  { %v1809_v50 = vsub.f32 0.0, %v1793_v45  ;;  %v1879_v51 = vadd.f32 1.0, %v2861_v47  ;;  %v1882_v63 = vmul.f32 -0.5, %v2861_v47  ;;  %v1885_v9 = vand.u32 2147483647, %v2861_v47 }
 0x266   :  { %v1808_v52 = vsub.f32 0.0, %v1792_v48  ;;  %v3446_v53 = vpop.xlane.xlu1 %1682  ;;  %2866 = vlog2.f32 %v1861_v49  ;;  %v1865_v6 = vadd.f32 1.0, %v1864_v62  ;;  %vm1868_vm5 = vcmp.lt.f32.partialorder %v1867_v7, 0.0004427343 }
 0x267   :  { %v3448_v54 = vpop.eup %2862  ;;  %v1830_v55 = vmul.f32 1.442695, %v1809_v50  ;;  %v1795_v56 = vand.u32 2147483647, %v3446_v53  ;;  %v3451_v57 = vpop.xlane.xlu0 %1679  ;;  %2868 = vlog2.f32 %v1879_v51  ;;  %v1883_v8 = vadd.f32 1.0, %v1882_v63 }
 0x268   :  { %v1794_v58 = vand.u32 2147483647, %v3451_v57  ;;  %v3454_v59 = vpop.eup %2864  ;;  %v1828_v60 = vmul.f32 1.442695, %v1808_v52  ;;  %v1852_v0 = vadd.f32 1.0, %v3448_v54  ;;  %v1855_v12 = vmul.f32 -0.5, %v3448_v54 }
 0x269   :  { %2870 = vpow2.f32 %v1830_v55  ;;  %v1811_v61 = vsub.f32 0.0, %v1795_v56  ;;  %v1870_v3 = vadd.f32 1.0, %v3454_v59  ;;  %v1866_v16 = vmul.f32 %v2859_v44, %v1865_v6 }
 0x26a   :  { %v1810_v2 = vsub.f32 0.0, %v1794_v58  ;;  %2872 = vlog2.f32 %v1852_v0  ;;  %v1884_v19 = vmul.f32 %v2861_v47, %v1883_v8  ;;  %vm3465_vm6 = vcmp.lt.f32.partialorder %v1885_v9, 0.0004427343 }
 0x26b   :  { %v1834_v1 = vmul.f32 1.442695, %v1811_v61  ;;  %2874 = vpow2.f32 %v1828_v60  ;;  %v1873_v20 = vmul.f32 -0.5, %v3454_v59  ;;  %v1858_v25 = vand.u32 2147483647, %v3448_v54 }
 0x26c   :  { %v1832_v4 = vmul.f32 1.442695, %v1810_v2  ;;  %v1856_v31 = vadd.f32 1.0, %v1855_v12  ;;  %v1876_v34 = vand.u32 2147483647, %v3454_v59  ;;  %v1742_v45 = vmax.f32 %v3436_v35, 0.0 }
 0x26d   :  { %2876 = vpow2.f32 %v1834_v1  ;;  %v1874_v42 = vadd.f32 1.0, %v1873_v20  ;;  %v1740_v47 = vmax.f32 %v3434_v33, 0.0  ;;  %vm3500_vm8 = vcmp.lt.f32.partialorder %v1858_v25, 0.0004427343 }
 0x26e   :  { %2878 = vlog2.f32 %v1870_v3  ;;  %vm1877_vm9 = vcmp.lt.f32.partialorder %v1876_v34, 0.0004427343  ;;  %vm1763_vm15 = vcmp.ne.f32.partialorder %v3446_v53, %v3446_v53  ;;  %vm1760_vm2 = vcmp.ne.f32.partialorder %v3443_v46, %v3443_v46 }
 0x26f   :  { %2880 = vpow2.f32 %v1832_v4  ;;  %v1875_v0 = vmul.f32 %v3454_v59, %v1874_v42 }
 0x270   :  { %v2867_v10 = vpop.eup %2866 }
 0x271   :  { %v2869_v13 = vpop.eup %2868  ;;  %v1863_v15 = vmul.f32 0.6931472, %v2867_v10 }
 0x272   :  { %v3463_v17 = vpop.xlane.xlu1 %1696  ;;  %v1881_v18 = vmul.f32 0.6931472, %v2869_v13 }
 0x273   :  { %v3470_v21 = vpop.eup %2870  ;;  %v1797_v22 = vand.u32 2147483647, %v3463_v17  ;;  %v3473_v23 = vpop.xlane.xlu0 %1693  ;;  %v1869_v24 = vsel %vm1868_vm5, %v1866_v16, %v1863_v15  ;;  %v1745_v16 = vmax.f32 %v3440_v43, 0.0  ;;  %vm1762_vm5 = vcmp.ne.f32.partialorder %v3451_v57, %v3451_v57 }
 0x274   :  { %v1796_v26 = vand.u32 2147483647, %v3473_v23  ;;  %v1997_v29 = vadd.f32 %v1869_v24, %v1741_v11  ;;  %v1887_v30 = vsel %vm3465_vm6, %v1884_v19, %v1881_v18  ;;  %v1897_v36 = vadd.f32 1.0, %v3470_v21  ;;  %v2873_v37 = vpop.eup %2872 }
 0x275   :  { %v1813_v32 = vsub.f32 0.0, %v1797_v22  ;;  %v1999_v41 = vadd.f32 %v1887_v30, %v1743_v14  ;;  %v3489_v44 = vpop.eup %2874  ;;  %v1854_v61 = vmul.f32 0.6931472, %v2873_v37  ;;  %v1900_v2 = vmul.f32 -0.5, %v3470_v21 }
 0x276   :  { %v1812_v38 = vsub.f32 0.0, %v1796_v26  ;;  %v3483_v39 = vpop.xlane.xlu1 %1710  ;;  %v2013_v40 = vsel %vm1757_vm4, %v3428_v27, %v1997_v29  ;;  %v1857_v27 = vmul.f32 %v3448_v54, %v1856_v31  ;;  %2882 = vlog2.f32 %v1897_v36 }
 0x277   :  { %v1838_v48 = vmul.f32 1.442695, %v1813_v32  ;;  %v1799_v49 = vand.u32 2147483647, %v3483_v39  ;;  %v3494_v50 = vpop.xlane.xlu0 %1707  ;;  %2048 = vperm.xlu1 %2856, %v2013_v40   ;;  %v3496_v51 = vpop.eup %2876  ;;  %v2015_v62 = vsel %vm1759_vm7, %v3430_v28, %v1999_v41  ;;  %v1888_v9 = vadd.f32 1.0, %v3489_v44 }
 0x278   :  { %v1798_v52 = vand.u32 2147483647, %v3494_v50  ;;  %v2879_v56 = vpop.eup %2878  ;;  %v1836_v58 = vmul.f32 1.442695, %v1812_v38  ;;  %v1860_v1 = vsel %vm3500_vm8, %v1857_v27, %v1854_v61  ;;  %v1915_v3 = vadd.f32 1.0, %v3496_v51 }
 0x279   :  { %2884 = vpow2.f32 %v1838_v48  ;;  %v1815_v60 = vsub.f32 0.0, %v1799_v49  ;;  %v1872_v63 = vmul.f32 0.6931472, %v2879_v56  ;;  %v1996_v7 = vadd.f32 %v1860_v1, %v1740_v47  ;;  %v3514_v4 = vpop.eup %2880 }
 0x27a   :  { %v1814_v6 = vsub.f32 0.0, %v1798_v52  ;;  %2886 = vpow2.f32 %v1836_v58  ;;  %v1918_v10 = vmul.f32 -0.5, %v3496_v51  ;;  %v1901_v12 = vadd.f32 1.0, %v1900_v2 }
 0x27b   :  { %v1842_v54 = vmul.f32 1.442695, %v1815_v60  ;;  %2054 = vperm.xlu1 %2856, %v2015_v62   ;;  %v1878_v8 = vsel %vm1877_vm9, %v1875_v0, %v1872_v63  ;;  %v2012_v59 = vsel %vm1756_vm10, %v3434_v33, %v1996_v7  ;;  %v1903_v14 = vand.u32 2147483647, %v3470_v21 }
 0x27c   :  { %v1998_v28 = vadd.f32 %v1878_v8, %v1742_v45  ;;  %2045 = vperm.xlu0 %2857, %v2012_v59   ;;  %v1840_v13 = vmul.f32 1.442695, %v1814_v6  ;;  %v1906_v15 = vadd.f32 1.0, %v3514_v4  ;;  %v1744_v33 = vmax.f32 %v3443_v46, 0.0 }
 0x27d   :  { %2888 = vpow2.f32 %v1842_v54  ;;  %v1921_v18 = vand.u32 2147483647, %v3496_v51  ;;  %v1919_v20 = vadd.f32 1.0, %v1918_v10  ;;  %v1891_v22 = vmul.f32 -0.5, %v3489_v44 }
 0x27e   :  { %v2014_v11 = vsel %vm1758_vm11, %v3436_v35, %v1998_v28  ;;  %2890 = vlog2.f32 %v1915_v3  ;;  %v1747_v35 = vmax.f32 %v3446_v53, 0.0  ;;  %v1902_v30 = vmul.f32 %v3470_v21, %v1901_v12 }
 0x27f   :  { %2051 = vperm.xlu1 %2856, %v2014_v11   ;;  %2892 = vlog2.f32 %v1888_v9  ;;  %v1894_v31 = vand.u32 2147483647, %v3489_v44  ;;  %vm1904_vm13 = vcmp.lt.f32.partialorder %v1903_v14, 0.0004427343  ;;  %vm3543_vm14 = vcmp.lt.f32.partialorder %v1921_v18, 0.0004427343 }
 0x280   :  { %v2883_v19 = vpop.eup %2882  ;;  %2894 = vlog2.f32 %v1906_v15  ;;  %v1909_v40 = vmul.f32 -0.5, %v3514_v4  ;;  %v1892_v45 = vadd.f32 1.0, %v1891_v22  ;;  %v1920_v27 = vmul.f32 %v3496_v51, %v1919_v20 }
 0x281   :  { %v1899_v29 = vmul.f32 0.6931472, %v2883_v19  ;;  %2896 = vpow2.f32 %v1840_v13  ;;  %vm3558_vm0 = vcmp.lt.f32.partialorder %v1894_v31, 0.0004427343  ;;  %v1912_v54 = vand.u32 2147483647, %v3514_v4 }
 0x282   :  { %v3531_v5 = vpop.xlane.xlu1 %1724  ;;  %v1910_v51 = vadd.f32 1.0, %v1909_v40  ;;  %vm1765_vm4 = vcmp.ne.f32.partialorder %v3463_v17, %v3463_v17  ;;  %vm1764_vm7 = vcmp.ne.f32.partialorder %v3473_v23, %v3473_v23  ;;  %vm1767_vm9 = vcmp.ne.f32.partialorder %v3483_v39, %v3483_v39 }
 0x283   :  { %v3534_v24 = vpop.eup %2884  ;;  %v1801_v25 = vand.u32 2147483647, %v3531_v5  ;;  %v3537_v26 = vpop.xlane.xlu0 %1721  ;;  %v1905_v37 = vsel %vm1904_vm13, %v1902_v30, %v1899_v29  ;;  %vm3589_vm1 = vcmp.lt.f32.partialorder %v1912_v54, 0.0004427343  ;;  %vm1766_vm11 = vcmp.ne.f32.partialorder %v3494_v50, %v3494_v50 }
 0x284   :  { %v1800_v32 = vand.u32 2147483647, %v3537_v26  ;;  %v1933_v34 = vadd.f32 1.0, %v3534_v24  ;;  %v2001_v21 = vadd.f32 %v1905_v37, %v1745_v16  ;;  %v3552_v47 = vpop.eup %2886  ;;  %v1936_v62 = vmul.f32 -0.5, %v3534_v24 }
 0x285   :  { %v1817_v36 = vsub.f32 0.0, %v1801_v25  ;;  %v1924_v6 = vadd.f32 1.0, %v3552_v47  ;;  %v1939_v16 = vand.u32 2147483647, %v3534_v24  ;;  %v1927_v18 = vmul.f32 -0.5, %v3552_v47 }
 0x286   :  { %v1816_v41 = vsub.f32 0.0, %v1800_v32  ;;  %v3548_v42 = vpop.xlane.xlu1 %1738  ;;  %2898 = vlog2.f32 %v1933_v34  ;;  %v2017_v60 = vsel %vm1761_vm12, %v3440_v43, %v2001_v21  ;;  %v1893_v43 = vmul.f32 %v3489_v44, %v1892_v45 }
 0x287   :  { %v1846_v48 = vmul.f32 1.442695, %v1817_v36  ;;  %v1803_v49 = vand.u32 2147483647, %v3548_v42  ;;  %v3555_v52 = vpop.xlane.xlu0 %1735  ;;  %v3562_v56 = vpop.eup %2888  ;;  %2060 = vperm.xlu1 %2856, %v2017_v60   ;;  %v1937_v11 = vadd.f32 1.0, %v1936_v62  ;;  %v1911_v44 = vmul.f32 %v3514_v4, %v1910_v51 }
 0x288   :  { %v1844_v58 = vmul.f32 1.442695, %v1816_v41  ;;  %v1802_v61 = vand.u32 2147483647, %v3555_v52  ;;  %v2891_v63 = vpop.eup %2890  ;;  %v1951_v9 = vadd.f32 1.0, %v3562_v56  ;;  %v1746_v4 = vmax.f32 %v3451_v57, 0.0 }
 0x289   :  { %2900 = vpow2.f32 %v1846_v48  ;;  %v1819_v0 = vsub.f32 0.0, %v1803_v49  ;;  %v2893_v1 = vpop.eup %2892  ;;  %v1917_v3 = vmul.f32 0.6931472, %v2891_v63  ;;  %v1938_v30 = vmul.f32 %v3534_v24, %v1937_v11 }
 0x28a   :  { %2902 = vpow2.f32 %v1844_v58  ;;  %v1818_v2 = vsub.f32 0.0, %v1802_v61  ;;  %v1890_v8 = vmul.f32 0.6931472, %v2893_v1  ;;  %v2895_v28 = vpop.eup %2894  ;;  %vm1940_vm3 = vcmp.lt.f32.partialorder %v1939_v16, 0.0004427343 }
 0x28b   :  { %v1850_v7 = vmul.f32 1.442695, %v1819_v0  ;;  %v1923_v10 = vsel %vm3543_vm14, %v1920_v27, %v1917_v3  ;;  %2904 = vlog2.f32 %v1924_v6  ;;  %v1908_v14 = vmul.f32 0.6931472, %v2895_v28  ;;  %v3578_v15 = vpop.eup %2896 }
 0x28c   :  { %v1848_v59 = vmul.f32 1.442695, %v1818_v2  ;;  %v2003_v12 = vadd.f32 %v1923_v10, %v1747_v35  ;;  %v1896_v13 = vsel %vm3558_vm0, %v1893_v43, %v1890_v8  ;;  %v1942_v31 = vadd.f32 1.0, %v3578_v15 }
 0x28d   :  { %2906 = vpow2.f32 %v1850_v7  ;;  %v2000_v35 = vadd.f32 %v1896_v13, %v1744_v33  ;;  %v1914_v25 = vsel %vm3589_vm1, %v1911_v44, %v1908_v14  ;;  %v1749_v33 = vmax.f32 %v3463_v17, 0.0 }
 0x28e   :  { %2908 = vpow2.f32 %v1848_v59  ;;  %v2019_v19 = vsel %vm1763_vm15, %v3446_v53, %v2003_v12  ;;  %v1954_v53 = vmul.f32 -0.5, %v3562_v56  ;;  %v1928_v32 = vadd.f32 1.0, %v1927_v18 }
 0x28f   :  { %2910 = vlog2.f32 %v1951_v9  ;;  %2066 = vperm.xlu1 %2856, %v2019_v19   ;;  %v2016_v36 = vsel %vm1760_vm2, %v3443_v46, %v2000_v35  ;;  %v2002_v37 = vadd.f32 %v1914_v25, %v1746_v4  ;;  %v1930_v41 = vand.u32 2147483647, %v3552_v47 }
 0x290   :  { %v2899_v22 = vpop.eup %2898  ;;  %2912 = vlog2.f32 %v1942_v31  ;;  %v1955_v45 = vadd.f32 1.0, %v1954_v53  ;;  %v1945_v48 = vmul.f32 -0.5, %v3578_v15  ;;  %v1929_v55 = vmul.f32 %v3552_v47, %v1928_v32 }
 0x291   :  { %v1935_v29 = vmul.f32 0.6931472, %v2899_v22  ;;  %v2018_v60 = vsel %vm1762_vm5, %v3451_v57, %v2002_v37  ;;  %v1957_v62 = vand.u32 2147483647, %v3562_v56  ;;  %v1748_v0 = vmax.f32 %v3473_v23, 0.0 }
 0x292   :  { %v1751_v51 = vmax.f32 %v3483_v39, 0.0  ;;  %vm1931_vm6 = vcmp.lt.f32.partialorder %v1930_v41, 0.0004427343  ;;  %v1956_v1 = vmul.f32 %v3562_v56, %v1955_v45  ;;  %v1946_v57 = vadd.f32 1.0, %v1945_v48 }
 0x293   :  { %v3602_v34 = vpop.eup %2900  ;;  %v1941_v38 = vsel %vm1940_vm3, %v1938_v30, %v1935_v29  ;;  %2057 = vperm.xlu1 %2856, %v2016_v36   ;;  %vm1958_vm8 = vcmp.lt.f32.partialorder %v1957_v62, 0.0004427343  ;;  %v1948_v8 = vand.u32 2147483647, %v3578_v15  ;;  %v1750_v16 = vmax.f32 %v3494_v50, 0.0 }
 0x294   :  { %v3605_v40 = vpop.eup %2902  ;;  %v2005_v24 = vadd.f32 %v1941_v38, %v1749_v33  ;;  %v1969_v21 = vadd.f32 1.0, %v3602_v34  ;;  %v1972_v2 = vmul.f32 -0.5, %v3602_v34  ;;  %v1947_v13 = vmul.f32 %v3578_v15, %v1946_v57 }
 0x295   :  { %v1960_v49 = vadd.f32 1.0, %v3605_v40  ;;  %v2905_v46 = vpop.eup %2904  ;;  %v1963_v7 = vmul.f32 -0.5, %v3605_v40  ;;  %v1975_v14 = vand.u32 2147483647, %v3602_v34  ;;  %vm1949_vm10 = vcmp.lt.f32.partialorder %v1948_v8, 0.0004427343 }
 0x296   :  { %v2021_v27 = vsel %vm1765_vm4, %v3463_v17, %v2005_v24  ;;  %2914 = vlog2.f32 %v1969_v21  ;;  %v1926_v61 = vmul.f32 0.6931472, %v2905_v46  ;;  %v1973_v10 = vadd.f32 1.0, %v1972_v2 }
 0x297   :  { %v3617_v58 = vpop.eup %2906  ;;  %2072 = vperm.xlu0 %2857, %v2021_v27   ;;  %2916 = vlog2.f32 %v1960_v49  ;;  %2063 = vperm.xlu1 %2856, %v2018_v60   ;;  %v1964_v44 = vadd.f32 1.0, %v1963_v7  ;;  %v1966_v18 = vand.u32 2147483647, %v3605_v40  ;;  %v1753_v35 = vmax.f32 %v3531_v5, 0.0 }
 0x298   :  { %v3621_v63 = vpop.eup %2908  ;;  %v1987_v17 = vadd.f32 1.0, %v3617_v58  ;;  %v1932_v54 = vsel %vm1931_vm6, %v1929_v55, %v1926_v61  ;;  %v1990_v11 = vmul.f32 -0.5, %v3617_v58  ;;  %v1974_v29 = vmul.f32 %v3602_v34, %v1973_v10 }
 0x299   :  { %v2911_v47 = vpop.eup %2910  ;;  %v2004_v3 = vadd.f32 %v1932_v54, %v1748_v0  ;;  %v1978_v43 = vadd.f32 1.0, %v3621_v63  ;;  %v1981_v15 = vmul.f32 -0.5, %v3621_v63  ;;  %vm1976_vm12 = vcmp.lt.f32.partialorder %v1975_v14, 0.0004427343 }
 0x29a   :  { %v1953_v6 = vmul.f32 0.6931472, %v2911_v47  ;;  %2918 = vlog2.f32 %v1987_v17  ;;  %v2913_v28 = vpop.eup %2912  ;;  %v1991_v30 = vadd.f32 1.0, %v1990_v11  ;;  %v1965_v53 = vmul.f32 %v3605_v40, %v1964_v44 }
 0x29b   :  { %v2020_v9 = vsel %vm1764_vm7, %v3473_v23, %v2004_v3  ;;  %2920 = vlog2.f32 %v1978_v43  ;;  %v1944_v12 = vmul.f32 0.6931472, %v2913_v28  ;;  %v1993_v31 = vand.u32 2147483647, %v3617_v58 }
 0x29c   :  { %v1959_v56 = vsel %vm1958_vm8, %v1956_v1, %v1953_v6  ;;  %2069 = vperm.xlu1 %2856, %v2020_v9   ;;  %v1752_v33 = vmax.f32 %v3537_v26, 0.0  ;;  %vm1967_vm13 = vcmp.lt.f32.partialorder %v1966_v18, 0.0004427343  ;;  %vm1769_vm14 = vcmp.ne.f32.partialorder %v3531_v5, %v3531_v5 }
 0x29d   :  { %v2007_v59 = vadd.f32 %v1959_v56, %v1751_v51  ;;  %v1950_v20 = vsel %vm1949_vm10, %v1947_v13, %v1944_v12  ;;  %v1982_v24 = vadd.f32 1.0, %v1981_v15  ;;  %v1992_v40 = vmul.f32 %v3617_v58, %v1991_v30 }
 0x29e   :  { %v2006_v4 = vadd.f32 %v1950_v20, %v1750_v16  ;;  %v1984_v45 = vand.u32 2147483647, %v3621_v63  ;;  %v1755_v48 = vmax.f32 %v3548_v42, 0.0  ;;  %vm1768_vm15 = vcmp.ne.f32.partialorder %v3537_v26, %v3537_v26 }
 0x29f   :  { %v2023_v23 = vsel %vm1767_vm9, %v3483_v39, %v2007_v59  ;;  %vm1994_vm0 = vcmp.lt.f32.partialorder %v1993_v31, 0.0004427343  ;;  %v1983_v58 = vmul.f32 %v3621_v63, %v1982_v24  ;;  %v1754_v61 = vmax.f32 %v3555_v52, 0.0 }
 0x2a0   :  { %v2915_v19 = vpop.eup %2914  ;;  %2078 = vperm.xlu0 %2857, %v2023_v23   ;;  %v2022_v32 = vsel %vm1766_vm11, %v3494_v50, %v2006_v4  ;;  %vm1771_vm1 = vcmp.ne.f32.partialorder %v3548_v42, %v3548_v42  ;;  %vm1985_vm2 = vcmp.lt.f32.partialorder %v1984_v45, 0.0004427343  ;;  %vm1770_vm3 = vcmp.ne.f32.partialorder %v3555_v52, %v3555_v52 }
 0x2a1   :  { %v2917_v22 = vpop.eup %2916  ;;  %v1971_v25 = vmul.f32 0.6931472, %v2915_v19  ;;  %2075 = vperm.xlu1 %2856, %v2022_v32   ;;  %v2947_v51 = vmov 0.0   ;;  %vm2948_vm4 = vmmov 0   ;;  %vm2103_vm5 = vcmask 130112  }
 0x2a2   :  { %v1962_v39 = vmul.f32 0.6931472, %v2917_v22  ;;  %2654 = vmatprep.subr.mxu0 %v2947_v51  ;;  %2656 = vmatprep.mubr.msk.f32.mxu0 %vm2948_vm4, %v2947_v51  ;;  %vm2168_vm6 = vcmask 1041409   ;;  %vm2170_vm7 = vcmask 1042434   ;;  %vm2172_vm8 = vcmask 1043459  }
 0x2a3   :  { %v1977_v36 = vsel %vm1976_vm12, %v1974_v29, %v1971_v25  ;;  %vm2174_vm9 = vcmask 1044484   ;;  %vm2176_vm10 = vcmask 1045509   ;;  %vm2178_vm11 = vcmask 1046534  }
 0x2a4   :  { %v2919_v37 = vpop.eup %2918  ;;  %v2009_v38 = vadd.f32 %v1977_v36, %v1753_v35  ;;  %v1968_v34 = vsel %vm1967_vm13, %v1965_v53, %v1962_v39  ;;  %vm2180_vm12 = vcmask 1047559   ;;  %vm2182_vm13 = vcmask 130048  }
 0x2a5   :  { %v2008_v41 = vadd.f32 %v1968_v34, %v1752_v33  ;;  %v1989_v21 = vmul.f32 0.6931472, %v2919_v37  ;;  %v2921_v49 = vpop.eup %2920 }
 0x2a6   :  { %v2025_v50 = vsel %vm1769_vm14, %v3531_v5, %v2009_v38  ;;  %v1980_v60 = vmul.f32 0.6931472, %v2921_v49  ;;  %vm2258_vm14 = vcmask 57344  }
 0x2a7   :  { %2084 = vperm.xlu0 %2857, %v2025_v50   ;;  %v2024_v46 = vsel %vm1768_vm15, %v3537_v26, %v2008_v41  ;;  %v1995_v27 = vsel %vm1994_vm0, %v1992_v40, %v1989_v21 }
 0x2a8   :  { %2081 = vperm.xlu1 %2856, %v2024_v46   ;;  %v2011_v55 = vadd.f32 %v1995_v27, %v1755_v48  ;;  %v1986_v62 = vsel %vm1985_vm2, %v1983_v58, %v1980_v60  ;;  %v2949_v46 = vmov 0.0625  }
 0x2a9   :  { %v2010_v0 = vadd.f32 %v1986_v62, %v1754_v61 }
 0x2aa   :  { %v2027_v5 = vsel %vm1771_vm1, %v3548_v42, %v2011_v55  ;;  %v2092_v42 = vlaneseq }
 0x2ab   :  { %2090 = vperm.xlu0 %2857, %v2027_v5   ;;  %v2026_v26 = vsel %vm1770_vm3, %v3555_v52, %v2010_v0 }
 0x2ac   :  { %2087 = vperm.xlu1 %2856, %v2026_v26   ;;  %v2093_v6 = vand.u32 127, %v2092_v42  ;;  %v2095_v43 = vshrl.u32 %v2092_v42, 7 }
 0x2ae   :  { %v2098_v9 = vadd.s32 4294967288, %v2093_v6  ;;  %v2096_v52 = vsub.s32 %v2093_v6, %v2095_v43 }
 0x2b0   :  { %v2101_v28 = vsub.s32 %v2098_v9, %v2095_v43 }
 0x2f6   :  { %v2049_v63 = vpop.permute.xlu1 %2048 }
 0x2f7   :  { %v2102_v16 = vrot.slane %v2049_v63, %v2101_v28 }
 0x2fa   :  { %v2055_v17 = vpop.permute.xlu1 %2054 }
 0x2fb   :  { %v2046_v3 = vpop.permute.xlu0 %2045  ;;  %v2112_v12 = vrot.slane %v2055_v17, %v2101_v28 }
 0x2fc   :  { %v2097_v13 = vrot.slane %v2046_v3, %v2096_v52 }
 0x2fe   :  { %v2052_v47 = vpop.permute.xlu1 %2051  ;;  %v2104_v39 = vsel %vm2103_vm5, %v2102_v16, %v2097_v13 }
 0x2ff   :  { %v2108_v10 = vrot.slane %v2052_v47, %v2096_v52 }
 0x301   :  { %v2113_v20 = vsel %vm2103_vm5, %v2112_v12, %v2108_v10 }
 0x302   :  { %v2169_v33 = vsel %vm2168_vm6, %v2113_v20, %v2104_v39 }
 0x306   :  { %v2061_v54 = vpop.permute.xlu1 %2060 }
 0x307   :  { %v2121_v23 = vrot.slane %v2061_v54, %v2101_v28 }
 0x30e   :  { %v2067_v1 = vpop.permute.xlu1 %2066 }
 0x30f   :  { %v2130_v15 = vrot.slane %v2067_v1, %v2101_v28 }
 0x312   :  { %v2058_v57 = vpop.permute.xlu1 %2057 }
 0x313   :  { %v2117_v11 = vrot.slane %v2058_v57, %v2096_v52 }
 0x315   :  { %v2122_v25 = vsel %vm2103_vm5, %v2121_v23, %v2117_v11 }
 0x316   :  { %v2064_v2 = vpop.permute.xlu1 %2063  ;;  %v2073_v7 = vpop.permute.xlu0 %2072  ;;  %v2171_v36 = vsel %vm2170_vm7, %v2122_v25, %v2169_v33 }
 0x317   :  { %v2126_v14 = vrot.slane %v2064_v2, %v2096_v52  ;;  %v2139_v18 = vrot.slane %v2073_v7, %v2101_v28 }
 0x319   :  { %v2131_v53 = vsel %vm2103_vm5, %v2130_v15, %v2126_v14 }
 0x31a   :  { %v2173_v34 = vsel %vm2172_vm8, %v2131_v53, %v2171_v36 }
 0x31b   :  { %v2070_v8 = vpop.permute.xlu1 %2069 }
 0x31c   :  { %v2135_v19 = vrot.slane %v2070_v8, %v2096_v52 }
 0x31e   :  { %v2140_v32 = vsel %vm2103_vm5, %v2139_v18, %v2135_v19 }
 0x31f   :  { %v2079_v56 = vpop.permute.xlu0 %2078  ;;  %v2175_v21 = vsel %vm2174_vm9, %v2140_v32, %v2173_v34 }
 0x320   :  { %v2076_v59 = vpop.permute.xlu1 %2075  ;;  %v2148_v22 = vrot.slane %v2079_v56, %v2101_v28 }
 0x321   :  { %v2144_v4 = vrot.slane %v2076_v59, %v2096_v52 }
 0x323   :  { %v2149_v37 = vsel %vm2103_vm5, %v2148_v22, %v2144_v4 }
 0x324   :  { %v2177_v45 = vsel %vm2176_vm10, %v2149_v37, %v2175_v21 }
 0x326   :  { %v2085_v44 = vpop.permute.xlu0 %2084 }
 0x327   :  { %v2082_v35 = vpop.permute.xlu1 %2081  ;;  %v2157_v29 = vrot.slane %v2085_v44, %v2101_v28 }
 0x328   :  { %v2153_v30 = vrot.slane %v2082_v35, %v2096_v52 }
 0x32a   :  { %v2091_v31 = vpop.permute.xlu0 %2090  ;;  %v2158_v24 = vsel %vm2103_vm5, %v2157_v29, %v2153_v30 }
 0x32b   :  { %v2166_v38 = vrot.slane %v2091_v31, %v2101_v28  ;;  %v2088_v41 = vpop.permute.xlu1 %2087  ;;  %v2179_v48 = vsel %vm2178_vm11, %v2158_v24, %v2177_v45 }
 0x32c   :  { %v2162_v40 = vrot.slane %v2088_v41, %v2096_v52 }
 0x32e   :  { %v2167_v50 = vsel %vm2103_vm5, %v2166_v38, %v2162_v40 }
 0x32f   :  { %v2181_v49 = vsel %vm2180_vm12, %v2167_v50, %v2179_v48 }
 0x330   :  { %2655 = vmatpush3.xpose.msk.msra.mxu0 %vm2182_vm13, %v2181_v49 }
 0x333   :  { %2657 = vmatmul.mubr.msk.f32.vlgmr.msra.gmra.mrb[16].mxu0 %vm2182_vm13, %v2949_v46 }
 0x406   :  { %v2254_v27 = vpop.f32.mrb[16].mxu0 }
 0x407   :  { %2259 = vst.msk [vmem:[#allocation2] sm:$0x1] %vm2258_vm14, %v2254_v27  ;;  %v2658_v55 = vpop.f32.mrb[17].mxu0 }
 0x408   :  { %2933 = shalt.err (!%p2930_p4)
}
 0x409   :  { %s2934_s6 = scalar_lea.hbm %s3693_s4, 16 }
 0x40a   :  { %p2935_p5 = scmp.ne.s32.totalorder %s3693_s4, %s2934_s6  ;;  %p2938_p6 = scmp.lt.u32.totalorder %s2934_s6, %s3693_s4 }
 0x40c   :  { %p2940_p7 = pnand %p2938_p6, %p2935_p5 }
 0x40e   :  { %2943 = shalt.err (!%p2940_p7)
}
 0x40f   :  { %2269 = dma.vmem_to_hbm [thread:$0]  %s2267_s27, 16, %s3693_s4, [#allocation3]  }
 0x410   :  { %2944 = dma.done.wait [#allocation3], 16  }
 0x411   :  { %2945 = vsyncadd [#allocation3], 4294967280 }
 0x412   :  { %2273 = vsyncpa [#allocation3], 1 }

</bundles_post_ra>
